<compile_context>
chip_gen: v5e
topology: v5e:2x2
jax: 0.10.0
libtpu: 0.0.40
codegen_flags: <defaults>
</compile_context>

<pallas_src>
import jax
import jax.numpy as jnp
from jax.experimental import pallas as pl
from jax.experimental.pallas import tpu as pltpu


# Lane-axis batch tile.  At 32768: h1 (64,Bt) f32 = 8 MiB, its bf16 copy 4 MiB,
# h2 (32,Bt) f32 = 4 MiB, layer-3 temp 4 MiB, I/O tiles ~0.5 MiB double-buffered
# -> ~20-24 MiB live, inside the explicit 48 MiB VMEM limit on every generation
# (and under v7x's 64 MiB physical per-TC VMEM).
DEFAULT_TILE_B = 32768


def _round_up(x, m):
    return ((x + m - 1) // m) * m


def mlp_kernel(xT_ref, w1_ref, b1_ref, w2_ref, b2_ref, w3_ref, b3_ref, oT_ref):
    x_row = xT_ref[...]                                            # (1, Bt) f32

    # Layer 1 (in_features == 1): VPU broadcast multiply, f32 (safe on v5e VPU too).
    # (64, 1) * (1, Bt) + (64, 1) -> (64, Bt)
    h1 = jnp.maximum(w1_ref[...] * x_row + b1_ref[...], 0.0)

    # Layer 2 on the MXU: bf16 operands, f32 accumulation.
    # (32, 64)bf16 @ (64, Bt)bf16 -> (32, Bt)f32
    h2 = jnp.dot(w2_ref[...], h1.astype(jnp.bfloat16),
                 preferred_element_type=jnp.float32) + b2_ref[...]
    h2 = jnp.maximum(h2, 0.0)

    # Layer 3 (out_features == 1): keep it off the MXU -> VPU multiply + sublane
    # reduce (XLU), exact f32.  (32, 1) * (32, Bt) -> sum over features -> (1, Bt).
    out = jnp.sum(w3_ref[...] * h2, axis=0, keepdims=True) + b3_ref[...]
    oT_ref[...] = out.astype(oT_ref.dtype)                         # lane-dense store


def mlp_nn_forward(x, params, *, tile_b=DEFAULT_TILE_B):
    """x: (B, 1) float32 (anything flattening to (B, 1)).  params: PyTorch convention."""
    B = x.shape[0]
    x2d = x.reshape(B, -1)                      # torch.flatten(x, 1)
    assert x2d.shape[1] == 1, f"MLP_NN expects 1 flattened feature, got {x2d.shape[1]}"
    xT = x2d.reshape(1, B)                      # batch -> lane axis

    # Lane-dense batch tile: multiple of 128, capped by tile_b and by ~half the
    # batch (rounded up to 128) so the parallel grid keeps >=2 steps when possible.
    tile_b = max(128, _round_up(int(tile_b), 128))
    bt = min(tile_b, max(128, _round_up(pl.cdiv(B, 2), 128)))
    grid = (pl.cdiv(B, bt),)                    # partial last block is masked by Pallas

    # Weights stay (out, in); biases become (out, 1) columns.
    w1 = params["l1_w"]                          # (64, 1)  f32
    b1 = params["l1_b"].reshape(-1, 1)           # (64, 1)  f32
    w2 = params["l2_w"].astype(jnp.bfloat16)     # (32, 64) bf16 (MXU operand)
    b2 = params["l2_b"].reshape(-1, 1)           # (32, 1)  f32
    w3 = params["l3_w"].reshape(-1, 1)           # (32, 1)  f32 (VPU layer 3)
    b3 = params["l3_b"].reshape(1, 1)            # (1, 1)   f32

    const = lambda a: pl.BlockSpec(a.shape, lambda i: (0, 0))  # resident across steps

    outT = pl.pallas_call(
        mlp_kernel,
        out_shape=jax.ShapeDtypeStruct((1, B), jnp.float32),
        grid=grid,
        in_specs=[
            pl.BlockSpec((1, bt), lambda i: (0, i)),   # x tile (batch on lanes)
            const(w1), const(b1),
            const(w2), const(b2),
            const(w3), const(b3),
        ],
        out_specs=pl.BlockSpec((1, bt), lambda i: (0, i)),
        compiler_params=pltpu.CompilerParams(
            dimension_semantics=("parallel",),
            vmem_limit_bytes=48 * 1024 * 1024,
        ),
    )(xT, w1, b1, w2, b2, w3, b3)

    return outT.reshape(B, 1)


def init_params(key):
    """Deterministic init matching nn.Linear shapes (Kaiming-uniform-like)."""
    ks = jax.random.split(key, 6)

    def linear(kw, kb, fan_in, fan_out):
        bound = 1.0 / jnp.sqrt(float(fan_in))
        w = jax.random.uniform(kw, (fan_out, fan_in), jnp.float32, -bound, bound)
        b = jax.random.uniform(kb, (fan_out,), jnp.float32, -bound, bound)
        return w, b

    l1_w, l1_b = linear(ks[0], ks[1], 1, 64)
    l2_w, l2_b = linear(ks[2], ks[3], 64, 32)
    l3_w, l3_b = linear(ks[4], ks[5], 32, 1)
    return {"l1_w": l1_w, "l1_b": l1_b,
            "l2_w": l2_w, "l2_b": l2_b,
            "l3_w": l3_w, "l3_b": l3_b}


def reference_forward(x, p):
    h = jnp.maximum(x.reshape(x.shape[0], -1) @ p["l1_w"].T + p["l1_b"], 0.0)
    h = jnp.maximum(h @ p["l2_w"].T + p["l2_b"], 0.0)
    return h @ p["l3_w"].T + p["l3_b"]


if __name__ == "__main__":
    key = jax.random.PRNGKey(0)
    kp, kx = jax.random.split(key)
    params = init_params(kp)

    # bf16 layer-2 operands (f32 accumulation) -> ~1e-2-level tolerance vs f32 reference.
    ATOL = RTOL = 3e-2

    # Small case (B=8): single grid step, partial 128-lane block, masked store.
    B = 8
    x = jax.random.normal(kx, (B, 1), jnp.float32)
    out = jax.block_until_ready(mlp_nn_forward(x, params))
    ref = reference_forward(x, params)
    assert out.shape == (B, 1)
    assert jnp.allclose(out, ref, atol=ATOL, rtol=RTOL), "mismatch vs reference (B=8)"

    # Multi-step grid with a partial boundary block (B=300, bt=128 -> grid=(3,)).
    B2 = 300
    x2 = jax.random.normal(jax.random.PRNGKey(1), (B2, 1), jnp.float32)
    out2 = jax.block_until_ready(mlp_nn_forward(x2, params, tile_b=128))
    ref2 = reference_forward(x2, params)
    assert out2.shape == (B2, 1)
    assert jnp.allclose(out2, ref2, atol=ATOL, rtol=RTOL), "mismatch vs reference (B=300)"

    # Evenly divisible multi-step grid (B=512, bt=128 -> grid=(4,)).
    B3 = 512
    x3 = jax.random.normal(jax.random.PRNGKey(2), (B3, 1), jnp.float32)
    out3 = jax.block_until_ready(mlp_nn_forward(x3, params, tile_b=128))
    ref3 = reference_forward(x3, params)
    assert out3.shape == (B3, 1)
    assert jnp.allclose(out3, ref3, atol=ATOL, rtol=RTOL), "mismatch vs reference (B=512)"

    print("KERNEL_OK")
</pallas_src>

<mosaic_0001>
module attributes {stable_mosaic.version = 11 : i64} {
  func.func @mlp_kernel(%arg0: i32, %arg1: memref<1x128xf32, #tpu.memory_space<vmem>>, %arg2: memref<64x1xf32, #tpu.memory_space<vmem>>, %arg3: memref<64x1xf32, #tpu.memory_space<vmem>>, %arg4: memref<32x64xbf16, #tpu.memory_space<vmem>>, %arg5: memref<32x1xf32, #tpu.memory_space<vmem>>, %arg6: memref<32x1xf32, #tpu.memory_space<vmem>>, %arg7: memref<1x1xf32, #tpu.memory_space<vmem>>, %arg8: memref<1x128xf32, #tpu.memory_space<vmem>>) attributes {dimension_semantics = [#tpu.dimension_semantics<parallel>], iteration_bounds = array<i64: 1>, scalar_prefetch = 0 : i64, scratch_operands = 0 : i64, tpu.core_type = #tpu.core_type<tc>, window_params = [{transform_indices = @transform_0, window_bounds = array<i64: 1, 128>}, {pipeline_mode = #tpu.pipeline_mode<synchronous>, transform_indices = @transform_1, window_bounds = array<i64: 64, 1>}, {pipeline_mode = #tpu.pipeline_mode<synchronous>, transform_indices = @transform_2, window_bounds = array<i64: 64, 1>}, {pipeline_mode = #tpu.pipeline_mode<synchronous>, transform_indices = @transform_3, window_bounds = array<i64: 32, 64>}, {pipeline_mode = #tpu.pipeline_mode<synchronous>, transform_indices = @transform_4, window_bounds = array<i64: 32, 1>}, {pipeline_mode = #tpu.pipeline_mode<synchronous>, transform_indices = @transform_5, window_bounds = array<i64: 32, 1>}, {pipeline_mode = #tpu.pipeline_mode<synchronous>, transform_indices = @transform_6, window_bounds = array<i64: 1, 1>}, {transform_indices = @transform_7, window_bounds = array<i64: 1, 128>}]} {
    %c0 = arith.constant 0 : index
    %c0_0 = arith.constant 0 : index
    %0 = vector.load %arg1[%c0, %c0_0] : memref<1x128xf32, #tpu.memory_space<vmem>>, vector<1x128xf32>
    %c0_1 = arith.constant 0 : index
    %c0_2 = arith.constant 0 : index
    %1 = vector.load %arg2[%c0_1, %c0_2] : memref<64x1xf32, #tpu.memory_space<vmem>>, vector<64x1xf32>
    %2 = vector.broadcast %1 : vector<64x1xf32> to vector<64x128xf32>
    %3 = vector.broadcast %0 : vector<1x128xf32> to vector<64x128xf32>
    %4 = arith.mulf %2, %3 : vector<64x128xf32>
    %c0_3 = arith.constant 0 : index
    %c0_4 = arith.constant 0 : index
    %5 = vector.load %arg3[%c0_3, %c0_4] : memref<64x1xf32, #tpu.memory_space<vmem>>, vector<64x1xf32>
    %6 = vector.broadcast %5 : vector<64x1xf32> to vector<64x128xf32>
    %7 = arith.addf %4, %6 : vector<64x128xf32>
    %cst = arith.constant 0.000000e+00 : f32
    %8 = vector.broadcast %cst : f32 to vector<64x128xf32>
    %9 = arith.maximumf %7, %8 : vector<64x128xf32>
    %c0_5 = arith.constant 0 : index
    %c0_6 = arith.constant 0 : index
    %10 = vector.load %arg4[%c0_5, %c0_6] : memref<32x64xbf16, #tpu.memory_space<vmem>>, vector<32x64xbf16>
    %11 = arith.truncf %9 : vector<64x128xf32> to vector<64x128xbf16>
    %cst_7 = arith.constant dense<0.000000e+00> : vector<32x128xf32>
    %12 = tpu.matmul %10, %11, %cst_7 {dimension_numbers = #tpu.dot_dimension_numbers<[1], [0], [0], [1], [0, 0, 1, 1], [], []>} : vector<32x64xbf16>, vector<64x128xbf16>, vector<32x128xf32> -> vector<32x128xf32>
    %c0_8 = arith.constant 0 : index
    %c0_9 = arith.constant 0 : index
    %13 = vector.load %arg5[%c0_8, %c0_9] : memref<32x1xf32, #tpu.memory_space<vmem>>, vector<32x1xf32>
    %14 = vector.broadcast %13 : vector<32x1xf32> to vector<32x128xf32>
    %15 = arith.addf %12, %14 : vector<32x128xf32>
    %cst_10 = arith.constant 0.000000e+00 : f32
    %16 = vector.broadcast %cst_10 : f32 to vector<32x128xf32>
    %17 = arith.maximumf %15, %16 : vector<32x128xf32>
    %c0_11 = arith.constant 0 : index
    %c0_12 = arith.constant 0 : index
    %18 = vector.load %arg6[%c0_11, %c0_12] : memref<32x1xf32, #tpu.memory_space<vmem>>, vector<32x1xf32>
    %19 = vector.broadcast %18 : vector<32x1xf32> to vector<32x128xf32>
    %20 = arith.mulf %19, %17 : vector<32x128xf32>
    %cst_13 = arith.constant dense<0.000000e+00> : vector<128xf32>
    %21 = vector.multi_reduction <add>, %20, %cst_13 [0] : vector<32x128xf32> to vector<128xf32>
    %22 = vector.shape_cast %21 : vector<128xf32> to vector<1x128xf32>
    %c0_14 = arith.constant 0 : index
    %c0_15 = arith.constant 0 : index
    %23 = vector.load %arg7[%c0_14, %c0_15] : memref<1x1xf32, #tpu.memory_space<vmem>>, vector<1x1xf32>
    %24 = vector.broadcast %23 : vector<1x1xf32> to vector<1x128xf32>
    %25 = arith.addf %22, %24 : vector<1x128xf32>
    %c0_16 = arith.constant 0 : index
    %c0_17 = arith.constant 0 : index
    %26 = vector.load %arg8[%c0_16, %c0_17] : memref<1x128xf32, #tpu.memory_space<vmem>>, vector<1x128xf32>
    tpu.vector_store %arg8[%c0_16, %c0_17], %25 {strides = array<i32>} : memref<1x128xf32, #tpu.memory_space<vmem>>, vector<1x128xf32>,
    return
  }
  func.func @transform_0(%arg0: i32) -> (i32, i32) {
    %c0_i32 = arith.constant 0 : i32
    %c0_i32_0 = arith.constant 0 : i32
    return %c0_i32, %arg0 : i32, i32
  }
  func.func @transform_1(%arg0: i32) -> (i32, i32) {
    %c0_i32 = arith.constant 0 : i32
    %c0_i32_0 = arith.constant 0 : i32
    %c0_i32_1 = arith.constant 0 : i32
    return %c0_i32, %c0_i32_0 : i32, i32
  }
  func.func @transform_2(%arg0: i32) -> (i32, i32) {
    %c0_i32 = arith.constant 0 : i32
    %c0_i32_0 = arith.constant 0 : i32
    %c0_i32_1 = arith.constant 0 : i32
    return %c0_i32, %c0_i32_0 : i32, i32
  }
  func.func @transform_3(%arg0: i32) -> (i32, i32) {
    %c0_i32 = arith.constant 0 : i32
    %c0_i32_0 = arith.constant 0 : i32
    %c0_i32_1 = arith.constant 0 : i32
    return %c0_i32, %c0_i32_0 : i32, i32
  }
  func.func @transform_4(%arg0: i32) -> (i32, i32) {
    %c0_i32 = arith.constant 0 : i32
    %c0_i32_0 = arith.constant 0 : i32
    %c0_i32_1 = arith.constant 0 : i32
    return %c0_i32, %c0_i32_0 : i32, i32
  }
  func.func @transform_5(%arg0: i32) -> (i32, i32) {
    %c0_i32 = arith.constant 0 : i32
    %c0_i32_0 = arith.constant 0 : i32
    %c0_i32_1 = arith.constant 0 : i32
    return %c0_i32, %c0_i32_0 : i32, i32
  }
  func.func @transform_6(%arg0: i32) -> (i32, i32) {
    %c0_i32 = arith.constant 0 : i32
    %c0_i32_0 = arith.constant 0 : i32
    %c0_i32_1 = arith.constant 0 : i32
    return %c0_i32, %c0_i32_0 : i32, i32
  }
  func.func @transform_7(%arg0: i32) -> (i32, i32) {
    %c0_i32 = arith.constant 0 : i32
    %c0_i32_0 = arith.constant 0 : i32
    return %c0_i32, %arg0 : i32, i32
  }
}

</mosaic_0001>

<bundles_post_ra>
// kernel: tpu_custom_call.1
= control target key start
LH: loop header
LB: loop body
LE: loop exit
PB: predicated region body
PF: predicated region fallthrough
CT: control target
= control target key end

     0   :  { %s465_s0 = inlined_call_operand.vmem [shape: f32[1,8], index: 0, kind: input, shape index: {}]   ;;  %s466_s1 = inlined_call_operand.vmem [shape: f32[64,1], index: 1, kind: input, shape index: {}]   ;;  %s467_s2 = inlined_call_operand.vmem [shape: f32[64,1], index: 2, kind: input, shape index: {}]   ;;  %s468_s3 = inlined_call_operand.vmem [shape: bf16[32,64], index: 3, kind: input, shape index: {}]   ;;  %s469_s4 = inlined_call_operand.vmem [shape: f32[32,1], index: 4, kind: input, shape index: {}]   ;;  %s470_s5 = inlined_call_operand.vmem [shape: f32[32,1], index: 5, kind: input, shape index: {}]   ;;  %s471_s6 = inlined_call_operand.<no memory space> [shape: f32[1,1], index: 6, kind: input, shape index: {}]   ;;  %s472_s7 = inlined_call_operand.hbm [shape: f32[1,8], index: 7, kind: output, shape index: {}]  }
   0x1   :  { %v12_v0 = vstv %s471_s6 }
   0x2   :  { %13 = vst [vmem:[#allocation2] sm:$0x1] %v12_v0 }
   0x3   :  { %v96_v1 = vld [vmem:[%s467_s2 + $0x30] sm:$0xff]  ;;  %v35_v3 = vld [vmem:[%s466_s1 + $0x20] sm:$0xff]  ;;  %v336_v4 = vmov 0  }
   0x4   :  { %v37_v2 = vld [vmem:[%s466_s1 + $0x30] sm:$0xff]  ;;  %308 = vset.pattern.permute.xlu2 %v336_v4  ;;  %307 = vset.pattern.permute.xlu1 %v336_v4 }
   0x5   :  { %306 = vset.pattern.permute.xlu0 %v336_v4  ;;  %130 = vperm.xlu1 %307, %v96_v1  }
   0x6   :  { %71 = vperm.xlu0 %306, %v37_v2   ;;  %61 = vperm.xlu2 %308, %v35_v3  }
   0x7   :  { %14 = vsyncpa [#allocation4], 0  ;;  %v97_v5 = vld [vmem:[%s467_s2 + $0x38] sm:$0xff]  ;;  %v36_v7 = vld [vmem:[%s466_s1 + $0x28] sm:$0xff]  ;;  %vm196_vm0 = vcmask 523264   ;;  %s279_s30 = sshll.u32 %s472_s7, 4  ;;  %s280_s30 = int_to_ptr.hbm [resolvable:$true] %s279_s30 }
   0x8   :  { %v38_v6 = vld [vmem:[%s466_s1 + $0x38] sm:$0xff]  ;;  %v95_v8 = vld [vmem:[%s467_s2 + $0x28] sm:$0xff]  ;;  %v94_v9 = vld [vmem:[%s467_s2 + $0x20] sm:$0xff] }
   0x9   :  { %v33_v10 = vld [vmem:[%s466_s1 + $0x10] sm:$0xff]  ;;  %v34_v12 = vld [vmem:[%s466_s1 + $0x18] sm:$0xff]  ;;  %v32_v14 = vld [vmem:[%s466_s1 + $0x8] sm:$0xff] }
   0xa   :  { %v92_v11 = vld [vmem:[%s467_s2 + $0x10] sm:$0xff]  ;;  %v93_v13 = vld [vmem:[%s467_s2 + $0x18] sm:$0xff]  ;;  %v90_v15 = vld [vmem:[%s467_s2] sm:$0xff] }
   0xb   :  { %v31_v16 = vld [vmem:[%s466_s1] sm:$0xff]  ;;  %v163_v18 = vld [vmem:[%s469_s4 + $0x8] sm:$0xff]  ;;  %v165_v20 = vld [vmem:[%s469_s4 + $0x18] sm:$0xff] }
   0xc   :  { %v162_v17 = vld [vmem:[%s469_s4] sm:$0xff]  ;;  %v91_v19 = vld [vmem:[%s467_s2 + $0x8] sm:$0xff]  ;;  %v164_v22 = vld [vmem:[%s469_s4 + $0x10] sm:$0xff] }
   0xd   :  { %135 = vperm.xlu1 %307, %v97_v5   ;;  %v226_v21 = vld [vmem:[%s470_s5] sm:$0xff]  ;;  %v228_v23 = vld [vmem:[%s470_s5 + $0x10] sm:$0xff]  ;;  %v229_v24 = vld [vmem:[%s470_s5 + $0x18] sm:$0xff] }
   0xe   :  { %76 = vperm.xlu0 %306, %v38_v6   ;;  %66 = vperm.xlu2 %308, %v36_v7   ;;  %v227_v25 = vld [vmem:[%s470_s5 + $0x8] sm:$0xff]  ;;  %v263_v26 = vld [vmem:[#allocation2] sm:$0x1] }
   0xf   :  { %v309_v30 = vld [vmem:[%s465_s0] ss:$0 sm:$0xff] }
  0x15   :  { %125 = vperm.xlu1 %307, %v95_v8   ;;  %v298_v8 = vld [vmem:[%s468_s3] sm:$0xff] }
  0x16   :  { %120 = vperm.xlu0 %306, %v94_v9   ;;  %51 = vperm.xlu2 %308, %v33_v10   ;;  %v299_v9 = vld [vmem:[%s468_s3 + $0x8] sm:$0xff]  ;;  %s337_s3 = smov [#allocation3]  }
  0x17   :  { %s277_s27 = sshll.u32 %s337_s3, 4  ;;  %s278_s27 = int_to_ptr.vmem [resolvable:$true] %s277_s27 }
  0x1d   :  { %110 = vperm.xlu1 %307, %v92_v11  }
  0x1e   :  { %56 = vperm.xlu0 %306, %v34_v12   ;;  %115 = vperm.xlu2 %308, %v93_v13  }
  0x25   :  { %46 = vperm.xlu1 %307, %v32_v14  }
  0x26   :  { %100 = vperm.xlu2 %308, %v90_v15   ;;  %41 = vperm.xlu0 %306, %v31_v16  }
  0x2d   :  { %168 = vperm.xlu1 %307, %v162_v17  }
  0x2e   :  { %173 = vperm.xlu2 %308, %v163_v18   ;;  %105 = vperm.xlu0 %306, %v91_v19  }
  0x35   :  { %183 = vperm.xlu1 %307, %v165_v20  }
  0x36   :  { %232 = vperm.xlu2 %308, %v226_v21   ;;  %178 = vperm.xlu0 %306, %v164_v22  }
  0x3d   :  { %242 = vperm.xlu1 %307, %v228_v23  }
  0x3e   :  { %247 = vperm.xlu2 %308, %v229_v24   ;;  %237 = vperm.xlu0 %306, %v227_v25  }
  0x46   :  { %266 = vperm.xlu0 %306, %v263_v26  }
  0x60   :  { %v62_v27 = vpop.permute.xlu2 %61 }
  0x61   :  { %v86_v41 = vmul.f32 %v309_v30, %v62_v27 }
  0x68   :  { %v67_v32 = vpop.permute.xlu2 %66 }
  0x69   :  { %v87_v40 = vmul.f32 %v309_v30, %v67_v32 }
  0x70   :  { %v52_v44 = vpop.permute.xlu2 %51 }
  0x71   :  { %v84_v51 = vmul.f32 %v309_v30, %v52_v44 }
  0x77   :  { %v131_v28 = vpop.permute.xlu1 %130 }
  0x78   :  { %v72_v29 = vpop.permute.xlu0 %71  ;;  %v116_v56 = vpop.permute.xlu2 %115 }
  0x79   :  { %v88_v31 = vmul.f32 %v309_v30, %v72_v29 }
  0x7b   :  { %v144_v35 = vadd.f32 %v131_v28, %v88_v31 }
  0x7d   :  { %v152_v38 = vmax.f32 %v144_v35, 0.0 }
  0x7f   :  { %v136_v33 = vpop.permute.xlu1 %135 }
  0x80   :  { %v77_v34 = vpop.permute.xlu0 %76  ;;  %v101_v0 = vpop.permute.xlu2 %100 }
  0x81   :  { %v89_v36 = vmul.f32 %v309_v30, %v77_v34 }
  0x83   :  { %v145_v37 = vadd.f32 %v136_v33, %v89_v36 }
  0x85   :  { %v153_v39 = vmax.f32 %v145_v37, 0.0 }
  0x87   :  { %v126_v42 = vpop.permute.xlu1 %125  ;;  %v161_v43 = vpack.c.bf16 %v153_v39, %v152_v38 }
  0x88   :  { %v143_v45 = vadd.f32 %v126_v42, %v87_v40  ;;  %v121_v46 = vpop.permute.xlu0 %120  ;;  %v174_v11 = vpop.permute.xlu2 %173 }
  0x89   :  { %v142_v47 = vadd.f32 %v121_v46, %v86_v41  ;;  %207 = vmatpush.bf16.msra.mxu0 %v161_v43  ;;  %300 = vmatpush.bf16.msra.mxu1 %v161_v43 }
  0x8a   :  { %v151_v48 = vmax.f32 %v143_v45, 0.0 }
  0x8b   :  { %v150_v49 = vmax.f32 %v142_v47, 0.0 }
  0x8d   :  { %v160_v50 = vpack.c.bf16 %v151_v48, %v150_v49 }
  0x8f   :  { %208 = vmatpush.bf16.msra.mxu0 %v160_v50  ;;  %301 = vmatpush.bf16.msra.mxu1 %v160_v50  ;;  %v111_v52 = vpop.permute.xlu1 %110 }
  0x90   :  { %v57_v53 = vpop.permute.xlu0 %56  ;;  %v140_v54 = vadd.f32 %v111_v52, %v84_v51  ;;  %v233_v17 = vpop.permute.xlu2 %232 }
  0x91   :  { %v85_v55 = vmul.f32 %v309_v30, %v57_v53 }
  0x92   :  { %v148_v58 = vmax.f32 %v140_v54, 0.0 }
  0x93   :  { %v141_v57 = vadd.f32 %v116_v56, %v85_v55 }
  0x95   :  { %v149_v59 = vmax.f32 %v141_v57, 0.0 }
  0x97   :  { %v159_v60 = vpack.c.bf16 %v149_v59, %v148_v58  ;;  %v47_v63 = vpop.permute.xlu1 %46 }
  0x98   :  { %v42_v61 = vpop.permute.xlu0 %41  ;;  %v83_v1 = vmul.f32 %v309_v30, %v47_v63  ;;  %v248_v33 = vpop.permute.xlu2 %247 }
  0x99   :  { %209 = vmatpush.bf16.msra.mxu0 %v159_v60  ;;  %302 = vmatpush.bf16.msra.mxu1 %v159_v60  ;;  %v82_v62 = vmul.f32 %v309_v30, %v42_v61 }
  0x9b   :  { %v138_v2 = vadd.f32 %v101_v0, %v82_v62 }
  0x9d   :  { %v146_v5 = vmax.f32 %v138_v2, 0.0 }
  0x9f   :  { %v169_v10 = vpop.permute.xlu1 %168 }
  0xa0   :  { %v106_v3 = vpop.permute.xlu0 %105 }
  0xa1   :  { %v139_v4 = vadd.f32 %v106_v3, %v83_v1 }
  0xa3   :  { %v147_v6 = vmax.f32 %v139_v4, 0.0 }
  0xa5   :  { %v158_v7 = vpack.c.bf16 %v147_v6, %v146_v5 }
  0xa7   :  { %210 = vmatpush.bf16.msra.mxu0 %v158_v7  ;;  %303 = vmatpush.bf16.msra.mxu1 %v158_v7  ;;  %v184_v15 = vpop.permute.xlu1 %183 }
  0xa8   :  { %v179_v14 = vpop.permute.xlu0 %178 }
  0xaa   :  { %296 = vmatmul.msk.bf16.vlgmr.msra.gmra.mxu0 %vm196_vm0, %v298_v8  ;;  %297 = vmatmul.msk.bf16.vlgmr.msra.gmra.mxu1 %vm196_vm0, %v299_v9 }
  0xaf   :  { %v243_v30 = vpop.permute.xlu1 %242 }
  0xb0   :  { %v238_v26 = vpop.permute.xlu0 %237 }
  0xb8   :  { %v267_v41 = vpop.permute.xlu0 %266 }
  0xb9   :  { %v269_v43 = vperm.slane %v267_v41, 0 }
 0x127   :  { %v212_v12 = vpop.f32.mrf.mxu0  ;;  %v217_v13 = vpop.f32.mrf.mxu1 }
 0x128   :  { %v213_v16 = vadd.f32 %v212_v12, %v169_v10  ;;  %v218_v18 = vadd.f32 %v217_v13, %v179_v14 }
 0x12a   :  { %v222_v21 = vmax.f32 %v213_v16, 0.0  ;;  %v224_v24 = vmax.f32 %v218_v18, 0.0 }
 0x12c   :  { %v250_v27 = vmul.f32 %v233_v17, %v222_v21  ;;  %v252_v31 = vmul.f32 %v243_v30, %v224_v24 }
 0x12f   :  { %v214_v19 = vpop.f32.mrf.mxu0  ;;  %v219_v20 = vpop.f32.mrf.mxu1 }
 0x130   :  { %v215_v22 = vadd.f32 %v214_v19, %v174_v11  ;;  %v220_v23 = vadd.f32 %v219_v20, %v184_v15 }
 0x132   :  { %v223_v25 = vmax.f32 %v215_v22, 0.0  ;;  %v225_v29 = vmax.f32 %v220_v23, 0.0 }
 0x134   :  { %v251_v28 = vmul.f32 %v238_v26, %v223_v25  ;;  %v253_v34 = vmul.f32 %v248_v33, %v225_v29 }
 0x136   :  { %v254_v32 = vadd.f32 %v251_v28, %v250_v27 }
 0x138   :  { %v255_v35 = vadd.f32 %v254_v32, %v252_v31 }
 0x13a   :  { %v256_v36 = vadd.f32 %v255_v35, %v253_v34 }
 0x13c   :  { %v257_v37 = vrot.slane %v256_v36, 4 }
 0x13e   :  { %v258_v38 = vadd.f32 %v257_v37, %v256_v36 }
 0x140   :  { %v259_v39 = vrot.slane %v258_v38, 2 }
 0x142   :  { %v260_v40 = vadd.f32 %v259_v39, %v258_v38 }
 0x144   :  { %v261_v42 = vrot.slane %v260_v40, 1 }
 0x146   :  { %v262_v44 = vadd.f32 %v261_v42, %v260_v40 }
 0x148   :  { %v270_v45 = vadd.f32 %v269_v43, %v262_v44 }
 0x14a   :  { %271 = vst [vmem:[#allocation3] sm:$0x1] %v270_v45 }
 0x14b   :  { %282 = dma.vmem_to_hbm [thread:$0]  %s278_s27, 16, %s280_s30, [#allocation4]  }
 0x14c   :  { %334 = dma.done.wait [#allocation4], 16  }
 0x14d   :  { %335 = vsyncadd [#allocation4], 4294967280 }
 0x14e   :  { %287 = vsyncpa [#allocation4], 1 }

</bundles_post_ra>
